<compile_context>
chip_gen: v6e
topology: v6e:2x2x1
jax: 0.10.0
libtpu: 0.0.40
codegen_flags: <defaults>
</compile_context>

<pallas_src>
import functools

import jax
import jax.numpy as jnp
import numpy as np
from jax.experimental import pallas as pl
from jax.experimental.pallas import tpu as pltpu


# ---------------------------------------------------------------------------
# Pallas kernel: whole decoder chain (3 resnet blocks + final projection)
# ---------------------------------------------------------------------------
def sdf_decoder_kernel(x_ref, ws_ref, bs_ref, wf_ref, bf_ref, o_ref, *,
                       num_blocks, chunk, use_bf16):
    # x_ref  : (C, TN)        channels on sublanes, voxels on lanes
    # ws_ref : (L, 2, C, C)   resnet conv weights, (out_ch, in_ch)  (f32 or bf16)
    # bs_ref : (L, 2, C, 1)   resnet conv biases (per-sublane column, f32)
    # wf_ref : (OUT, C)       final conv weight, pre-scaled by 1/scale
    # bf_ref : (OUT, 1)       final conv bias,   pre-scaled by 1/scale (f32)
    # o_ref  : (OUT, TN)      lane-dense output tile
    mm_dtype = jnp.bfloat16 if use_bf16 else jnp.float32
    tn = x_ref.shape[-1]
    n_chunks = tn // chunk

    def lrelu(v):
        # leaky_relu(negative_slope=0.01) == max(v, 0.01*v): 2 VPU ops, not 3.
        return jnp.maximum(v, 0.01 * v)

    # Hoist weight/bias loads out of the chunk loop (tiny: ~1 vreg per 32x32 W).
    # When use_bf16, weights were pre-cast in the wrapper -> astype is a no-op.
    w_pairs = [
        (ws_ref[l, 0].astype(mm_dtype), ws_ref[l, 1].astype(mm_dtype),
         bs_ref[l, 0], bs_ref[l, 1])
        for l in range(num_blocks)
    ]
    wf = wf_ref[...].astype(mm_dtype)
    bf = bf_ref[...]

    # Process the full chain over lane sub-chunks so intermediates stay in
    # vregs between matmuls / activations (cuts vld/vst traffic; biggest win
    # on v5e which has a single vst slot).
    @pl.loop(0, n_chunks)
    def _(c):
        start = pl.multiple_of(c * chunk, chunk)
        h = x_ref[:, pl.ds(start, chunk)].astype(jnp.float32)
        for (w1, w2, b1, b2) in w_pairs:   # static, small, fixed trip-count
            y = jnp.dot(w1, h.astype(mm_dtype),
                        preferred_element_type=jnp.float32) + b1
            y = lrelu(y)
            y = jnp.dot(w2, y.astype(mm_dtype),
                        preferred_element_type=jnp.float32) + b2
            h = lrelu(y + h)                # residual
        out = jnp.dot(wf, h.astype(mm_dtype),
                      preferred_element_type=jnp.float32) + bf
        o_ref[:, pl.ds(start, chunk)] = out.astype(o_ref.dtype)


# ---------------------------------------------------------------------------
# Tiling helpers
# ---------------------------------------------------------------------------
def _pick_lane_tile(N, tile_n):
    """Pick lane tile (multiple of 128). Prefer one dividing N: no HBM pad pass."""
    cap = max(128, (min(int(tile_n), N) // 128) * 128)
    if N % 128 == 0:
        tn = cap
        while tn >= 128 and N % tn != 0:
            tn -= 128
        if tn == N or tn >= max(512, cap // 4):
            return tn, N                       # divides N -> no padding needed
    # Ragged N: fall back to padding the lane dim up to a multiple of cap.
    # TODO(synk): replace with an in-kernel masked tail store to avoid the pad copy.
    return cap, pl.cdiv(N, cap) * cap


def _pick_chunk(tn):
    """Lane sub-chunk (~512) dividing tn: keeps the chain's intermediates in vregs."""
    if tn <= 512:
        return tn
    for c in (512, 256, 128):
        if tn % c == 0:
            return c
    return tn


# ---------------------------------------------------------------------------
# Wrapper
# ---------------------------------------------------------------------------
def sdf_decoder_forward(x_ncdhw, params, *, grid_n, out_features, K, scale,
                        tile_n=8192, use_bf16_matmul=False,
                        match_torch_layout=True, x_buffer_count=None):
    """x_ncdhw: (B, ef_dim, D, H, W) with D*H*W == (grid_n-1)^3.

    Returns (B, N, K, out_features) when match_torch_layout=True (module
    semantics), else (B, out_features*K, N) to skip the post-kernel transpose
    for consumers that can take channel-major output.
    """
    ws, bs, wf, bf = params
    B, C = x_ncdhw.shape[0], x_ncdhw.shape[1]
    N = (grid_n - 1) ** 3
    out_dim = out_features * K
    L = ws.shape[0]

    # Fold 1/scale into the final projection (no separate output pass in HBM).
    inv_scale = jnp.float32(1.0 / scale)
    wf_s = wf * inv_scale
    bf_s = bf * inv_scale

    # bf16 MXU inputs (f32 accumulation): pre-cast weights once in the wrapper.
    if use_bf16_matmul:
        ws = ws.astype(jnp.bfloat16)
        wf_s = wf_s.astype(jnp.bfloat16)

    # NCDHW -> (B, C, N): pure reshape (contiguous), no HBM transpose needed.
    x3d = x_ncdhw.reshape(B, C, N)

    tn, n_pad = _pick_lane_tile(N, tile_n)
    if n_pad != N:
        x3d = jnp.pad(x3d, ((0, 0), (0, 0), (0, n_pad - N)))
    chunk = _pick_chunk(tn)

    kernel = functools.partial(sdf_decoder_kernel, num_blocks=L, chunk=chunk,
                               use_bf16=use_bf16_matmul)

    # Optional extra input buffering (only if a profile shows exposed DMA).
    if x_buffer_count is None:
        x_spec = pl.BlockSpec((None, C, tn), lambda b, j: (b, 0, j))
    else:
        x_spec = pl.BlockSpec((None, C, tn), lambda b, j: (b, 0, j),
                              pipeline_mode=pl.Buffered(x_buffer_count))

    out3d = pl.pallas_call(
        kernel,
        out_shape=jax.ShapeDtypeStruct((B, out_dim, n_pad), x_ncdhw.dtype),
        grid_spec=pltpu.PrefetchScalarGridSpec(
            num_scalar_prefetch=0,
            grid=(B, n_pad // tn),
            in_specs=[
                x_spec,
                pl.BlockSpec((L, 2, C, C), lambda b, j: (0, 0, 0, 0)),
                pl.BlockSpec((L, 2, C, 1), lambda b, j: (0, 0, 0, 0)),
                pl.BlockSpec((out_dim, C), lambda b, j: (0, 0)),
                pl.BlockSpec((out_dim, 1), lambda b, j: (0, 0)),
            ],
            out_specs=pl.BlockSpec((None, out_dim, tn), lambda b, j: (b, 0, j)),
        ),
        compiler_params=pltpu.CompilerParams(
            dimension_semantics=("parallel", "parallel")),   # megacore on v7x
    )(x3d, ws, bs, wf_s, bf_s)

    if not match_torch_layout:
        return out3d[:, :, :N]           # (B, OUT, N): no transpose HBM pass

    # (B, OUT, N) -> (B, N, OUT) -> (B, N, K, OF); matches torch .view/.permute
    # chain (1/scale already folded in). Under jit the slice + transpose fuse
    # into one XLA pass; the kernel output stays lane-dense.
    out3d = out3d[:, :, :N]
    out = jnp.transpose(out3d, (0, 2, 1)).reshape(B, N, K, out_features)
    return out


# ---------------------------------------------------------------------------
# Pure-JAX reference (for correctness check)
# ---------------------------------------------------------------------------
def sdf_decoder_ref(x_ncdhw, params, *, grid_n, out_features, K, scale):
    ws, bs, wf, bf = params
    B, C = x_ncdhw.shape[0], x_ncdhw.shape[1]
    N = (grid_n - 1) ** 3
    h = jnp.transpose(x_ncdhw.reshape(B, C, N), (0, 2, 1)).reshape(B * N, C)
    h = h.astype(jnp.float32)

    def lrelu(v):
        return jnp.where(v > 0, v, 0.01 * v)

    for l in range(ws.shape[0]):
        y = h @ ws[l, 0].T + bs[l, 0][:, 0]
        y = lrelu(y)
        y = y @ ws[l, 1].T + bs[l, 1][:, 0]
        h = lrelu(y + h)
    out = h @ wf.T + bf[:, 0]
    return out.reshape(B, N, K, out_features) / scale


# ---------------------------------------------------------------------------
# Deterministic parameter init (synthetic; shapes from the module __init__)
# ---------------------------------------------------------------------------
def init_params(key, ef_dim, out_features, K, decoder_layers):
    out_dim = out_features * K
    k1, k2, k3, k4 = jax.random.split(key, 4)
    # Conv3d(ef, ef, 1) weight is (out, in, 1, 1, 1); we store (out, in).
    ws = jax.random.normal(k1, (decoder_layers, 2, ef_dim, ef_dim),
                           jnp.float32) * (1.0 / np.sqrt(ef_dim))
    bs = jax.random.normal(k2, (decoder_layers, 2, ef_dim, 1), jnp.float32) * 0.01
    wf = jax.random.normal(k3, (out_dim, ef_dim), jnp.float32) * (1.0 / np.sqrt(ef_dim))
    bf = jax.random.normal(k4, (out_dim, 1), jnp.float32) * 0.01
    return ws, bs, wf, bf


if __name__ == "__main__":
    # Small config consistent with the module: grid_n=9 -> (grid_n-1)^3 = 512 voxels,
    # spatial dims 8x8x8, ef_dim=32 channels, 3 resnet blocks, out_features=4, K=2.
    B, ef_dim, grid_n = 2, 32, 9
    out_features, K, scale, decoder_layers = 4, 2, 2.0, 3
    S = grid_n - 1  # 8

    key = jax.random.PRNGKey(0)
    kx, kp = jax.random.split(key)
    x = jax.random.normal(kx, (B, ef_dim, S, S, S), jnp.float32)  # NCDHW like torch
    params = init_params(kp, ef_dim, out_features, K, decoder_layers)

    ref = sdf_decoder_ref(x, params, grid_n=grid_n, out_features=out_features,
                          K=K, scale=scale)

    # f32 path: strict tolerance (matches the torch module numerics).
    fwd_f32 = jax.jit(functools.partial(
        sdf_decoder_forward, grid_n=grid_n, out_features=out_features, K=K,
        scale=scale, tile_n=8192, use_bf16_matmul=False))
    out = jax.block_until_ready(fwd_f32(x, params))
    np.testing.assert_allclose(np.asarray(out), np.asarray(ref),
                               rtol=1e-5, atol=1e-5)

    # bf16-MXU path (recommended on v6e/v7x when accuracy budget allows):
    # looser tolerance by design (bf16 rounding compounds over the 3 blocks).
    fwd_bf16 = jax.jit(functools.partial(
        sdf_decoder_forward, grid_n=grid_n, out_features=out_features, K=K,
        scale=scale, tile_n=8192, use_bf16_matmul=True))
    out_bf16 = jax.block_until_ready(fwd_bf16(x, params))
    np.testing.assert_allclose(np.asarray(out_bf16), np.asarray(ref),
                               rtol=5e-2, atol=5e-2)

    assert out.shape == (B, (grid_n - 1) ** 3, K, out_features)
    print("KERNEL_OK")
</pallas_src>

<mosaic_0001>
module attributes {stable_mosaic.version = 11 : i64} {
  func.func @sdf_decoder_kernel(%arg0: i32, %arg1: i32, %arg2: memref<1x32x512xf32, #tpu.memory_space<vmem>>, %arg3: memref<3x2x32x32xf32, #tpu.memory_space<vmem>>, %arg4: memref<3x2x32x1xf32, #tpu.memory_space<vmem>>, %arg5: memref<8x32xf32, #tpu.memory_space<vmem>>, %arg6: memref<8x1xf32, #tpu.memory_space<vmem>>, %arg7: memref<1x8x512xf32, #tpu.memory_space<vmem>>) attributes {dimension_semantics = [#tpu.dimension_semantics<parallel>, #tpu.dimension_semantics<parallel>], iteration_bounds = array<i64: 2, 1>, scalar_prefetch = 0 : i64, scratch_operands = 0 : i64, tpu.core_type = #tpu.core_type<tc>, window_params = [{transform_indices = @transform_0, window_bounds = array<i64: 1, 32, 512>}, {pipeline_mode = #tpu.pipeline_mode<synchronous>, transform_indices = @transform_1, window_bounds = array<i64: 3, 2, 32, 32>}, {pipeline_mode = #tpu.pipeline_mode<synchronous>, transform_indices = @transform_2, window_bounds = array<i64: 3, 2, 32, 1>}, {pipeline_mode = #tpu.pipeline_mode<synchronous>, transform_indices = @transform_3, window_bounds = array<i64: 8, 32>}, {pipeline_mode = #tpu.pipeline_mode<synchronous>, transform_indices = @transform_4, window_bounds = array<i64: 8, 1>}, {transform_indices = @transform_5, window_bounds = array<i64: 1, 8, 512>}]} {
    %c0 = arith.constant 0 : index
    %c0_0 = arith.constant 0 : index
    %c0_1 = arith.constant 0 : index
    %c0_2 = arith.constant 0 : index
    %0 = vector.load %arg3[%c0, %c0_0, %c0_1, %c0_2] : memref<3x2x32x32xf32, #tpu.memory_space<vmem>>, vector<1x1x32x32xf32>
    %1 = vector.shape_cast %0 : vector<1x1x32x32xf32> to vector<32x32xf32>
    %c0_3 = arith.constant 0 : index
    %c1 = arith.constant 1 : index
    %c0_4 = arith.constant 0 : index
    %c0_5 = arith.constant 0 : index
    %2 = vector.load %arg3[%c0_3, %c1, %c0_4, %c0_5] : memref<3x2x32x32xf32, #tpu.memory_space<vmem>>, vector<1x1x32x32xf32>
    %3 = vector.shape_cast %2 : vector<1x1x32x32xf32> to vector<32x32xf32>
    %c0_6 = arith.constant 0 : index
    %c0_7 = arith.constant 0 : index
    %c0_8 = arith.constant 0 : index
    %c0_9 = arith.constant 0 : index
    %4 = vector.load %arg4[%c0_6, %c0_7, %c0_8, %c0_9] : memref<3x2x32x1xf32, #tpu.memory_space<vmem>>, vector<1x1x32x1xf32>
    %5 = vector.shape_cast %4 : vector<1x1x32x1xf32> to vector<32x1xf32>
    %c0_10 = arith.constant 0 : index
    %c1_11 = arith.constant 1 : index
    %c0_12 = arith.constant 0 : index
    %c0_13 = arith.constant 0 : index
    %6 = vector.load %arg4[%c0_10, %c1_11, %c0_12, %c0_13] : memref<3x2x32x1xf32, #tpu.memory_space<vmem>>, vector<1x1x32x1xf32>
    %7 = vector.shape_cast %6 : vector<1x1x32x1xf32> to vector<32x1xf32>
    %c1_14 = arith.constant 1 : index
    %c0_15 = arith.constant 0 : index
    %c0_16 = arith.constant 0 : index
    %c0_17 = arith.constant 0 : index
    %8 = vector.load %arg3[%c1_14, %c0_15, %c0_16, %c0_17] : memref<3x2x32x32xf32, #tpu.memory_space<vmem>>, vector<1x1x32x32xf32>
    %9 = vector.shape_cast %8 : vector<1x1x32x32xf32> to vector<32x32xf32>
    %c1_18 = arith.constant 1 : index
    %c1_19 = arith.constant 1 : index
    %c0_20 = arith.constant 0 : index
    %c0_21 = arith.constant 0 : index
    %10 = vector.load %arg3[%c1_18, %c1_19, %c0_20, %c0_21] : memref<3x2x32x32xf32, #tpu.memory_space<vmem>>, vector<1x1x32x32xf32>
    %11 = vector.shape_cast %10 : vector<1x1x32x32xf32> to vector<32x32xf32>
    %c1_22 = arith.constant 1 : index
    %c0_23 = arith.constant 0 : index
    %c0_24 = arith.constant 0 : index
    %c0_25 = arith.constant 0 : index
    %12 = vector.load %arg4[%c1_22, %c0_23, %c0_24, %c0_25] : memref<3x2x32x1xf32, #tpu.memory_space<vmem>>, vector<1x1x32x1xf32>
    %13 = vector.shape_cast %12 : vector<1x1x32x1xf32> to vector<32x1xf32>
    %c1_26 = arith.constant 1 : index
    %c1_27 = arith.constant 1 : index
    %c0_28 = arith.constant 0 : index
    %c0_29 = arith.constant 0 : index
    %14 = vector.load %arg4[%c1_26, %c1_27, %c0_28, %c0_29] : memref<3x2x32x1xf32, #tpu.memory_space<vmem>>, vector<1x1x32x1xf32>
    %15 = vector.shape_cast %14 : vector<1x1x32x1xf32> to vector<32x1xf32>
    %c2 = arith.constant 2 : index
    %c0_30 = arith.constant 0 : index
    %c0_31 = arith.constant 0 : index
    %c0_32 = arith.constant 0 : index
    %16 = vector.load %arg3[%c2, %c0_30, %c0_31, %c0_32] : memref<3x2x32x32xf32, #tpu.memory_space<vmem>>, vector<1x1x32x32xf32>
    %17 = vector.shape_cast %16 : vector<1x1x32x32xf32> to vector<32x32xf32>
    %c2_33 = arith.constant 2 : index
    %c1_34 = arith.constant 1 : index
    %c0_35 = arith.constant 0 : index
    %c0_36 = arith.constant 0 : index
    %18 = vector.load %arg3[%c2_33, %c1_34, %c0_35, %c0_36] : memref<3x2x32x32xf32, #tpu.memory_space<vmem>>, vector<1x1x32x32xf32>
    %19 = vector.shape_cast %18 : vector<1x1x32x32xf32> to vector<32x32xf32>
    %c2_37 = arith.constant 2 : index
    %c0_38 = arith.constant 0 : index
    %c0_39 = arith.constant 0 : index
    %c0_40 = arith.constant 0 : index
    %20 = vector.load %arg4[%c2_37, %c0_38, %c0_39, %c0_40] : memref<3x2x32x1xf32, #tpu.memory_space<vmem>>, vector<1x1x32x1xf32>
    %21 = vector.shape_cast %20 : vector<1x1x32x1xf32> to vector<32x1xf32>
    %c2_41 = arith.constant 2 : index
    %c1_42 = arith.constant 1 : index
    %c0_43 = arith.constant 0 : index
    %c0_44 = arith.constant 0 : index
    %22 = vector.load %arg4[%c2_41, %c1_42, %c0_43, %c0_44] : memref<3x2x32x1xf32, #tpu.memory_space<vmem>>, vector<1x1x32x1xf32>
    %23 = vector.shape_cast %22 : vector<1x1x32x1xf32> to vector<32x1xf32>
    %c0_45 = arith.constant 0 : index
    %c0_46 = arith.constant 0 : index
    %24 = vector.load %arg5[%c0_45, %c0_46] : memref<8x32xf32, #tpu.memory_space<vmem>>, vector<8x32xf32>
    %c0_47 = arith.constant 0 : index
    %c0_48 = arith.constant 0 : index
    %25 = vector.load %arg6[%c0_47, %c0_48] : memref<8x1xf32, #tpu.memory_space<vmem>>, vector<8x1xf32>
    %c0_i32 = arith.constant 0 : i32
    %c1_i32 = arith.constant 1 : i32
    %26 = arith.muli %c0_i32, %c1_i32 : i32
    %c0_i32_49 = arith.constant 0 : i32
    %27 = arith.addi %c0_i32_49, %26 : i32
    %c512_i32 = arith.constant 512 : i32
    %28 = arith.muli %27, %c512_i32 : i32
    %29 = tpu.assume_multiple %28, 512 : i32
    %c0_50 = arith.constant 0 : index
    %c0_51 = arith.constant 0 : index
    %30 = arith.index_cast %29 : i32 to index
    %31 = vector.load %arg2[%c0_50, %c0_51, %30] : memref<1x32x512xf32, #tpu.memory_space<vmem>>, vector<1x32x512xf32>
    %32 = vector.shape_cast %31 : vector<1x32x512xf32> to vector<32x512xf32>
    %cst = arith.constant dense<0.000000e+00> : vector<32x512xf32>
    %33 = tpu.matmul %1, %32, %cst {dimension_numbers = #tpu.dot_dimension_numbers<[1], [0], [0], [1], [0, 0, 1, 1], [], []>} : vector<32x32xf32>, vector<32x512xf32>, vector<32x512xf32> -> vector<32x512xf32>
    %34 = vector.broadcast %5 : vector<32x1xf32> to vector<32x512xf32>
    %35 = arith.addf %33, %34 : vector<32x512xf32>
    %cst_52 = arith.constant 0.00999999977 : f32
    %36 = vector.broadcast %cst_52 : f32 to vector<32x512xf32>
    %37 = arith.mulf %36, %35 : vector<32x512xf32>
    %38 = arith.maximumf %35, %37 : vector<32x512xf32>
    %cst_53 = arith.constant dense<0.000000e+00> : vector<32x512xf32>
    %39 = tpu.matmul %3, %38, %cst_53 {dimension_numbers = #tpu.dot_dimension_numbers<[1], [0], [0], [1], [0, 0, 1, 1], [], []>} : vector<32x32xf32>, vector<32x512xf32>, vector<32x512xf32> -> vector<32x512xf32>
    %40 = vector.broadcast %7 : vector<32x1xf32> to vector<32x512xf32>
    %41 = arith.addf %39, %40 : vector<32x512xf32>
    %42 = arith.addf %41, %32 : vector<32x512xf32>
    %cst_54 = arith.constant 0.00999999977 : f32
    %43 = vector.broadcast %cst_54 : f32 to vector<32x512xf32>
    %44 = arith.mulf %43, %42 : vector<32x512xf32>
    %45 = arith.maximumf %42, %44 : vector<32x512xf32>
    %cst_55 = arith.constant dense<0.000000e+00> : vector<32x512xf32>
    %46 = tpu.matmul %9, %45, %cst_55 {dimension_numbers = #tpu.dot_dimension_numbers<[1], [0], [0], [1], [0, 0, 1, 1], [], []>} : vector<32x32xf32>, vector<32x512xf32>, vector<32x512xf32> -> vector<32x512xf32>
    %47 = vector.broadcast %13 : vector<32x1xf32> to vector<32x512xf32>
    %48 = arith.addf %46, %47 : vector<32x512xf32>
    %cst_56 = arith.constant 0.00999999977 : f32
    %49 = vector.broadcast %cst_56 : f32 to vector<32x512xf32>
    %50 = arith.mulf %49, %48 : vector<32x512xf32>
    %51 = arith.maximumf %48, %50 : vector<32x512xf32>
    %cst_57 = arith.constant dense<0.000000e+00> : vector<32x512xf32>
    %52 = tpu.matmul %11, %51, %cst_57 {dimension_numbers = #tpu.dot_dimension_numbers<[1], [0], [0], [1], [0, 0, 1, 1], [], []>} : vector<32x32xf32>, vector<32x512xf32>, vector<32x512xf32> -> vector<32x512xf32>
    %53 = vector.broadcast %15 : vector<32x1xf32> to vector<32x512xf32>
    %54 = arith.addf %52, %53 : vector<32x512xf32>
    %55 = arith.addf %54, %45 : vector<32x512xf32>
    %cst_58 = arith.constant 0.00999999977 : f32
    %56 = vector.broadcast %cst_58 : f32 to vector<32x512xf32>
    %57 = arith.mulf %56, %55 : vector<32x512xf32>
    %58 = arith.maximumf %55, %57 : vector<32x512xf32>
    %cst_59 = arith.constant dense<0.000000e+00> : vector<32x512xf32>
    %59 = tpu.matmul %17, %58, %cst_59 {dimension_numbers = #tpu.dot_dimension_numbers<[1], [0], [0], [1], [0, 0, 1, 1], [], []>} : vector<32x32xf32>, vector<32x512xf32>, vector<32x512xf32> -> vector<32x512xf32>
    %60 = vector.broadcast %21 : vector<32x1xf32> to vector<32x512xf32>
    %61 = arith.addf %59, %60 : vector<32x512xf32>
    %cst_60 = arith.constant 0.00999999977 : f32
    %62 = vector.broadcast %cst_60 : f32 to vector<32x512xf32>
    %63 = arith.mulf %62, %61 : vector<32x512xf32>
    %64 = arith.maximumf %61, %63 : vector<32x512xf32>
    %cst_61 = arith.constant dense<0.000000e+00> : vector<32x512xf32>
    %65 = tpu.matmul %19, %64, %cst_61 {dimension_numbers = #tpu.dot_dimension_numbers<[1], [0], [0], [1], [0, 0, 1, 1], [], []>} : vector<32x32xf32>, vector<32x512xf32>, vector<32x512xf32> -> vector<32x512xf32>
    %66 = vector.broadcast %23 : vector<32x1xf32> to vector<32x512xf32>
    %67 = arith.addf %65, %66 : vector<32x512xf32>
    %68 = arith.addf %67, %58 : vector<32x512xf32>
    %cst_62 = arith.constant 0.00999999977 : f32
    %69 = vector.broadcast %cst_62 : f32 to vector<32x512xf32>
    %70 = arith.mulf %69, %68 : vector<32x512xf32>
    %71 = arith.maximumf %68, %70 : vector<32x512xf32>
    %cst_63 = arith.constant dense<0.000000e+00> : vector<8x512xf32>
    %72 = tpu.matmul %24, %71, %cst_63 {dimension_numbers = #tpu.dot_dimension_numbers<[1], [0], [0], [1], [0, 0, 1, 1], [], []>} : vector<8x32xf32>, vector<32x512xf32>, vector<8x512xf32> -> vector<8x512xf32>
    %73 = vector.broadcast %25 : vector<8x1xf32> to vector<8x512xf32>
    %74 = arith.addf %72, %73 : vector<8x512xf32>
    %c0_64 = arith.constant 0 : index
    %c0_65 = arith.constant 0 : index
    %75 = arith.index_cast %29 : i32 to index
    %76 = vector.load %arg7[%c0_64, %c0_65, %75] : memref<1x8x512xf32, #tpu.memory_space<vmem>>, vector<1x8x512xf32>
    %77 = vector.shape_cast %76 : vector<1x8x512xf32> to vector<8x512xf32>
    %78 = vector.shape_cast %74 : vector<8x512xf32> to vector<1x8x512xf32>
    tpu.vector_store %arg7[%c0_64, %c0_65, %75], %78 {strides = array<i32>} : memref<1x8x512xf32, #tpu.memory_space<vmem>>, vector<1x8x512xf32>,
    %c1_i32_66 = arith.constant 1 : i32
    return
  }
  func.func @transform_0(%arg0: i32, %arg1: i32) -> (i32, i32, i32) {
    %c0_i32 = arith.constant 0 : i32
    %c0_i32_0 = arith.constant 0 : i32
    return %arg0, %c0_i32, %arg1 : i32, i32, i32
  }
  func.func @transform_1(%arg0: i32, %arg1: i32) -> (i32, i32, i32, i32) {
    %c0_i32 = arith.constant 0 : i32
    %c0_i32_0 = arith.constant 0 : i32
    %c0_i32_1 = arith.constant 0 : i32
    %c0_i32_2 = arith.constant 0 : i32
    %c0_i32_3 = arith.constant 0 : i32
    return %c0_i32, %c0_i32_0, %c0_i32_1, %c0_i32_2 : i32, i32, i32, i32
  }
  func.func @transform_2(%arg0: i32, %arg1: i32) -> (i32, i32, i32, i32) {
    %c0_i32 = arith.constant 0 : i32
    %c0_i32_0 = arith.constant 0 : i32
    %c0_i32_1 = arith.constant 0 : i32
    %c0_i32_2 = arith.constant 0 : i32
    %c0_i32_3 = arith.constant 0 : i32
    return %c0_i32, %c0_i32_0, %c0_i32_1, %c0_i32_2 : i32, i32, i32, i32
  }
  func.func @transform_3(%arg0: i32, %arg1: i32) -> (i32, i32) {
    %c0_i32 = arith.constant 0 : i32
    %c0_i32_0 = arith.constant 0 : i32
    %c0_i32_1 = arith.constant 0 : i32
    return %c0_i32, %c0_i32_0 : i32, i32
  }
  func.func @transform_4(%arg0: i32, %arg1: i32) -> (i32, i32) {
    %c0_i32 = arith.constant 0 : i32
    %c0_i32_0 = arith.constant 0 : i32
    %c0_i32_1 = arith.constant 0 : i32
    return %c0_i32, %c0_i32_0 : i32, i32
  }
  func.func @transform_5(%arg0: i32, %arg1: i32) -> (i32, i32, i32) {
    %c0_i32 = arith.constant 0 : i32
    %c0_i32_0 = arith.constant 0 : i32
    return %arg0, %c0_i32, %arg1 : i32, i32, i32
  }
}

</mosaic_0001>

<bundles_post_ra>
// kernel: sdf_decoder_forward.1
= control target key start
LH: loop header
LB: loop body
LE: loop exit
PB: predicated region body
PF: predicated region fallthrough
CT: control target
= control target key end

     0   :  { %s2269_s18 = smov 0   ;;  %s2271_s19 = smov 0   ;;  %s2748_s0 = inlined_call_operand.vmem [shape: f32[2,32,512], index: 0, kind: input, shape index: {}]   ;;  %s2749_s1 = inlined_call_operand.vmem [shape: f32[3,2,32,32], index: 1, kind: input, shape index: {}]   ;;  %s2750_s2 = inlined_call_operand.vmem [shape: f32[3,2,32,1], index: 2, kind: input, shape index: {}]   ;;  %s2751_s3 = inlined_call_operand.vmem [shape: f32[8,32], index: 3, kind: input, shape index: {}]   ;;  %s2752_s4 = inlined_call_operand.vmem [shape: f32[8,1], index: 4, kind: input, shape index: {}]   ;;  %s2753_s5 = inlined_call_operand.vmem [shape: f32[2,8,512], index: 5, kind: output, shape index: {}]  }
   0x1   :  { %s2273_s20 = smov 0  }
   0x2 LB: > { %s27_s21 = sadd.s32 1, %s2231_s19  ;;  %p2086_p0 = scmp.ge.s32.totalorder %s2235_s20, 1  ;;  %s2235_s20 = sphi %s2273_s20, %s15_s20   ;;  %s2231_s19 = sphi %s2271_s19, %s2755_s19   ;;  %s2227_s18 = sphi %s2269_s18, %s2754_s18  }
   0x3   : > { %p29_p1 = scmp.ge.s32.totalorder %s27_s21, 2  ;;  %p208_p2 = scmp.lt.s32.totalorder %s2235_s20, 3 }
   0x5   : > { %s2757_s21 = smov (%p29_p1, %s27_s21), 0  ;;  %p209_p3 = pnand %p2086_p0, %p208_p2 }
   0x6   : > { %p245_p4 = scmp.lt.s32.totalorder (!%p209_p3), %s2227_s18, 1 }
   0x7   : > { %212 = sbr.rel (%p209_p3) target bundleno = 1554 (0x612), region = 40 }
   0xc   : > { %v2237_v0 = vmov 0.0   ;;  %v276_v1 = vld [vmem:[%s2750_s2 + $0x18] sm:$0xff]  ;;  %s2759_s18 = smov (!%p245_p4, %s2227_s18), 1  ;;  %v2238_v2 = vmov 0   ;;  %v274_v3 = vld [vmem:[%s2750_s2 + $0x8] sm:$0xff]  ;;  %v264_v20 = vld [vmem:[%s2749_s1] sm:$0xff] }
   0xd   : > { %437 = vmatprep.mubr.f32.mxu0 %v2237_v0  ;;  %526 = vmatprep.mubr.f32.mxu1 %v2237_v0  ;;  %s2183_s26 = sshll.u32 %s2759_s18, 7  ;;  %vm360_vm0 = vcmask 261120   ;;  %v275_v21 = vld [vmem:[%s2750_s2 + $0x10] sm:$0xff]  ;;  %v273_v22 = vld [vmem:[%s2750_s2] sm:$0xff]  ;;  %v265_v23 = vld [vmem:[%s2749_s1 + $0x8] sm:$0xff]  ;;  %s2184_s17 = sshll.u32 %s2759_s18, 5 }
   0xe   : > { %2211 = vset.pattern.permute.xlu0 %v2238_v2  ;;  %2212 = vset.pattern.permute.xlu1 %v2238_v2  ;;  %s252_s29 = scalar_lea.vmem %s2748_s0, %s2183_s26  ;;  %v2098_v24 = vld [vmem:[%s2750_s2 + $0x38] sm:$0xff]  ;;  %v2097_v25 = vld [vmem:[%s2750_s2 + $0x30] sm:$0xff]  ;;  %v2096_v27 = vld [vmem:[%s2750_s2 + $0x28] sm:$0xff]  ;;  %s262_s24 = scalar_lea.vmem %s2753_s5, %s2184_s17 }
   0xf   : > { %357 = vperm.xlu0 %2211, %v276_v1   ;;  %347 = vperm.xlu1 %2212, %v274_v3   ;;  %v2301_v4 = vld [vmem:[%s252_s29 + $0x68] sm:$0xff]  ;;  %v2303_v5 = vld [vmem:[%s252_s29 + $0x78] sm:$0xff]  ;;  %v2305_v6 = vld [vmem:[%s252_s29 + $0x60] sm:$0xff] }
  0x10   : > { %397 = vmatprep.subr.mxu0 %v2301_v4  ;;  %486 = vmatprep.subr.mxu1 %v2303_v5  ;;  %v2309_v7 = vld [vmem:[%s252_s29 + $0x70] sm:$0xff]  ;;  %v2311_v8 = vld [vmem:[%s252_s29 + $0x48] sm:$0xff]  ;;  %v2313_v9 = vld [vmem:[%s252_s29 + $0x58] sm:$0xff] }
  0x11   : > { %398 = vmatpush1.msra.mxu0 %v2305_v6  ;;  %487 = vmatpush1.msra.mxu1 %v2309_v7  ;;  %v2317_v10 = vld [vmem:[%s252_s29 + $0x40] sm:$0xff]  ;;  %v2319_v11 = vld [vmem:[%s252_s29 + $0x50] sm:$0xff]  ;;  %v2321_v12 = vld [vmem:[%s252_s29 + $0x28] sm:$0xff] }
  0x12   : > { %399 = vmatprep.subr.mxu0 %v2311_v8  ;;  %488 = vmatprep.subr.mxu1 %v2313_v9  ;;  %v2325_v13 = vld [vmem:[%s252_s29 + $0x38] sm:$0xff]  ;;  %v2327_v14 = vld [vmem:[%s252_s29 + $0x20] sm:$0xff]  ;;  %v2329_v15 = vld [vmem:[%s252_s29 + $0x30] sm:$0xff] }
  0x13   : > { %400 = vmatpush1.msra.mxu0 %v2317_v10  ;;  %489 = vmatpush1.msra.mxu1 %v2319_v11  ;;  %v2333_v16 = vld [vmem:[%s252_s29 + $0x8] sm:$0xff]  ;;  %v2335_v17 = vld [vmem:[%s252_s29 + $0x18] sm:$0xff]  ;;  %v2339_v18 = vld [vmem:[%s252_s29] sm:$0xff] }
  0x14   : > { %401 = vmatprep.subr.mxu0 %v2321_v12  ;;  %490 = vmatprep.subr.mxu1 %v2325_v13  ;;  %v2341_v19 = vld [vmem:[%s252_s29 + $0x10] sm:$0xff]  ;;  %v2095_v28 = vld [vmem:[%s2750_s2 + $0x20] sm:$0xff]  ;;  %v267_v29 = vld [vmem:[%s2749_s1 + $0x18] sm:$0xff] }
  0x15   : > { %402 = vmatpush1.msra.mxu0 %v2327_v14  ;;  %491 = vmatpush1.msra.mxu1 %v2329_v15  ;;  %v266_v26 = vld [vmem:[%s2749_s1 + $0x10] sm:$0xff]  ;;  %v2110_v30 = vld [vmem:[%s2750_s2 + $0x58] sm:$0xff]  ;;  %v2108_v32 = vld [vmem:[%s2750_s2 + $0x48] sm:$0xff] }
  0x16   : > { %403 = vmatprep.subr.mxu0 %v2333_v16  ;;  %492 = vmatprep.subr.mxu1 %v2335_v17  ;;  %v2109_v31 = vld [vmem:[%s2750_s2 + $0x50] sm:$0xff]  ;;  %v2107_v33 = vld [vmem:[%s2750_s2 + $0x40] sm:$0xff]  ;;  %v2114_v34 = vld [vmem:[%s2750_s2 + $0x78] sm:$0xff] }
  0x17   : > { %404 = vmatpush1.msra.mxu0 %v2339_v18  ;;  %493 = vmatpush1.msra.mxu1 %v2341_v19  ;;  %v2113_v35 = vld [vmem:[%s2750_s2 + $0x70] sm:$0xff]  ;;  %v2112_v36 = vld [vmem:[%s2750_s2 + $0x68] sm:$0xff]  ;;  %v2111_v37 = vld [vmem:[%s2750_s2 + $0x60] sm:$0xff] }
  0x18   : > { %2131 = vmatmul.mubr.msk.f32.vlgmr.msra.gmra.mxu0 %vm360_vm0, %v264_v20  ;;  %2135 = vmatmul.mubr.msk.f32.vlgmr.msra.gmra.mxu1 %vm360_vm0, %v264_v20  ;;  %v2126_v38 = vld [vmem:[%s2750_s2 + $0x98] sm:$0xff]  ;;  %v2125_v39 = vld [vmem:[%s2750_s2 + $0x90] sm:$0xff]  ;;  %v2124_v40 = vld [vmem:[%s2750_s2 + $0x88] sm:$0xff] }
  0x19   : > { %443 = vmatprep.mubr.f32.mxu0 %v2237_v0  ;;  %532 = vmatprep.mubr.f32.mxu1 %v2237_v0  ;;  %v2123_v41 = vld [vmem:[%s2750_s2 + $0x80] sm:$0xff]  ;;  %v2130_v42 = vld [vmem:[%s2750_s2 + $0xb8] sm:$0xff]  ;;  %v2129_v43 = vld [vmem:[%s2750_s2 + $0xb0] sm:$0xff] }
  0x1a   : > { %352 = vperm.xlu0 %2211, %v275_v21   ;;  %342 = vperm.xlu1 %2212, %v273_v22   ;;  %v2128_v44 = vld [vmem:[%s2750_s2 + $0xa8] sm:$0xff]  ;;  %v2127_v45 = vld [vmem:[%s2750_s2 + $0xa0] sm:$0xff] }
  0x1b   : > { %v323_v46 = vld [vmem:[%s2752_s4] sm:$0xff] }
  0x1c   : > { %2132 = vmatmul.mubr.msk.f32.gmra.mxu0 %vm360_vm0, %v265_v23  ;;  %2136 = vmatmul.mubr.msk.f32.gmra.mxu1 %vm360_vm0, %v265_v23 }
  0x1d   : > { %449 = vmatprep.mubr.f32.mxu0 %v2237_v0  ;;  %538 = vmatprep.mubr.f32.mxu1 %v2237_v0 }
  0x1e   : > { %600 = vperm.xlu0 %2211, %v2098_v24   ;;  %595 = vperm.xlu1 %2212, %v2097_v25  }
  0x20   : > { %2133 = vmatmul.mubr.msk.f32.gmra.mxu0 %vm360_vm0, %v266_v26  ;;  %2137 = vmatmul.mubr.msk.f32.gmra.mxu1 %vm360_vm0, %v266_v26 }
  0x21   : > { %455 = vmatprep.mubr.f32.mxu0 %v2237_v0  ;;  %544 = vmatprep.mubr.f32.mxu1 %v2237_v0 }
  0x22   : > { %590 = vperm.xlu0 %2211, %v2096_v27   ;;  %585 = vperm.xlu1 %2212, %v2095_v28  }
  0x24   : > { %2134 = vmatmul.mubr.msk.f32.gmra.mxu0 %vm360_vm0, %v267_v29  ;;  %2138 = vmatmul.mubr.msk.f32.gmra.mxu1 %vm360_vm0, %v267_v29 }
  0x25   : > { %679 = vmatprep.mubr.f32.mxu0 %v2237_v0  ;;  %768 = vmatprep.mubr.f32.mxu1 %v2237_v0 }
  0x26   : > { %858 = vperm.xlu0 %2211, %v2110_v30   ;;  %853 = vperm.xlu1 %2212, %v2109_v31  }
  0x2a   : > { %848 = vperm.xlu0 %2211, %v2108_v32   ;;  %843 = vperm.xlu1 %2212, %v2107_v33  }
  0x2e   : > { %1100 = vperm.xlu0 %2211, %v2114_v34   ;;  %1095 = vperm.xlu1 %2212, %v2113_v35  }
  0x32   : > { %1090 = vperm.xlu0 %2211, %v2112_v36   ;;  %1085 = vperm.xlu1 %2212, %v2111_v37  }
  0x36   : > { %1358 = vperm.xlu0 %2211, %v2126_v38   ;;  %1353 = vperm.xlu1 %2212, %v2125_v39  }
  0x3a   : > { %1348 = vperm.xlu0 %2211, %v2124_v40   ;;  %1343 = vperm.xlu1 %2212, %v2123_v41  }
  0x3e   : > { %1600 = vperm.xlu0 %2211, %v2130_v42   ;;  %1595 = vperm.xlu1 %2212, %v2129_v43  }
  0x42   : > { %1590 = vperm.xlu0 %2211, %v2128_v44   ;;  %1585 = vperm.xlu1 %2212, %v2127_v45  }
  0x46   : > { %1843 = vperm.xlu0 %2211, %v323_v46  }
  0x8a   : > { %v358_v53 = vpop.permute.xlu0 %357  ;;  %v348_v56 = vpop.permute.xlu1 %347 }
  0x95   : > { %v353_v61 = vpop.permute.xlu0 %352  ;;  %v343_v2 = vpop.permute.xlu1 %342 }
  0xd8   : > { %v439_v47 = vpop.f32.mrf.mxu0  ;;  %v528_v48 = vpop.f32.mrf.mxu1 }
  0xd9   : > { %v440_v40 = vadd.f32 %v439_v47, %v343_v2  ;;  %v529_v41 = vadd.f32 %v528_v48, %v343_v2 }
  0xda   : > { %v441_v49 = vpop.f32.mrf.mxu0  ;;  %v530_v50 = vpop.f32.mrf.mxu1 }
  0xdb   : > { %v442_v22 = vadd.f32 %v441_v49, %v343_v2  ;;  %v531_v36 = vadd.f32 %v530_v50, %v343_v2  ;;  %v551_v50 = vmul.f32 0.01, %v440_v40 }
  0xdc   : > { %v445_v51 = vpop.f32.mrf.mxu0  ;;  %v534_v52 = vpop.f32.mrf.mxu1 }
  0xdd   : > { %v446_v23 = vadd.f32 %v445_v51, %v348_v56  ;;  %v535_v32 = vadd.f32 %v534_v52, %v348_v56  ;;  %v552_v52 = vmul.f32 0.01, %v442_v22 }
  0xde   : > { %v447_v54 = vpop.f32.mrf.mxu0  ;;  %v536_v55 = vpop.f32.mrf.mxu1 }
  0xdf   : > { %v448_v28 = vadd.f32 %v447_v54, %v348_v56  ;;  %v537_v29 = vadd.f32 %v536_v55, %v348_v56  ;;  %v555_v51 = vmul.f32 0.01, %v446_v23  ;;  %v557_v54 = vmul.f32 0.01, %v535_v32 }
  0xe0   : > { %v451_v57 = vpop.f32.mrf.mxu0  ;;  %v540_v58 = vpop.f32.mrf.mxu1  ;;  %v554_v56 = vmul.f32 0.01, %v531_v36  ;;  %v568_v2 = vmax.f32 %v442_v22, %v552_v52  ;;  %v2092_v22 = vld [vmem:[%s2749_s1 + $0x28] sm:$0xff] }
  0xe1   : > { %v452_v24 = vadd.f32 %v451_v57, %v353_v61  ;;  %v541_v25 = vadd.f32 %v540_v58, %v353_v61  ;;  %v556_v44 = vmul.f32 0.01, %v448_v28  ;;  %v558_v45 = vmul.f32 0.01, %v537_v29 }
  0xe2   : > { %v453_v59 = vpop.f32.mrf.mxu0  ;;  %v542_v60 = vpop.f32.mrf.mxu1 }
  0xe3   : > { %v454_v62 = vadd.f32 %v453_v59, %v353_v61  ;;  %v543_v3 = vadd.f32 %v542_v60, %v353_v61  ;;  %v559_v42 = vmul.f32 0.01, %v452_v24  ;;  %v561_v43 = vmul.f32 0.01, %v541_v25 }
  0xe4   : > { %v457_v63 = vpop.f32.mrf.mxu0  ;;  %v546_v1 = vpop.f32.mrf.mxu1  ;;  %v553_v59 = vmul.f32 0.01, %v529_v41  ;;  %v572_v60 = vmax.f32 %v448_v28, %v556_v44  ;;  %v574_v61 = vmax.f32 %v537_v29, %v558_v45 }
  0xe5   : > { %v458_v20 = vadd.f32 %v457_v63, %v358_v53  ;;  %v547_v21 = vadd.f32 %v546_v1, %v358_v53  ;;  %v560_v33 = vmul.f32 0.01, %v454_v62  ;;  %v562_v37 = vmul.f32 0.01, %v543_v3 }
  0xe6   : > { %v459_v26 = vpop.f32.mrf.mxu0  ;;  %v548_v27 = vpop.f32.mrf.mxu1  ;;  %v575_v47 = vmax.f32 %v452_v24, %v559_v42  ;;  %v577_v48 = vmax.f32 %v541_v25, %v561_v43  ;;  %v571_v63 = vmax.f32 %v446_v23, %v555_v51  ;;  %v573_v1 = vmax.f32 %v535_v32, %v557_v54  ;;  %v2093_v23 = vld [vmem:[%s2749_s1 + $0x30] sm:$0xff]  ;;  %v2094_v24 = vld [vmem:[%s2749_s1 + $0x38] sm:$0xff] }
  0xe7   : > { %v460_v30 = vadd.f32 %v459_v26, %v358_v53  ;;  %v549_v31 = vadd.f32 %v548_v27, %v358_v53  ;;  %v563_v34 = vmul.f32 0.01, %v458_v20  ;;  %v565_v35 = vmul.f32 0.01, %v547_v21  ;;  %v596_v32 = vpop.permute.xlu1 %595 }
  0xe8   : > { %v576_v57 = vmax.f32 %v454_v62, %v560_v33  ;;  %v578_v58 = vmax.f32 %v543_v3, %v562_v37  ;;  %v567_v62 = vmax.f32 %v440_v40, %v551_v50  ;;  %v569_v3 = vmax.f32 %v529_v41, %v553_v59 }
  0xe9   : > { %v564_v38 = vmul.f32 0.01, %v460_v30  ;;  %v566_v39 = vmul.f32 0.01, %v549_v31  ;;  %v579_v55 = vmax.f32 %v458_v20, %v563_v34  ;;  %v581_v53 = vmax.f32 %v547_v21, %v565_v35  ;;  %v2091_v21 = vld [vmem:[%s2749_s1 + $0x20] sm:$0xff] }
  0xea   : > { %v570_v20 = vmax.f32 %v531_v36, %v554_v56 }
  0xeb   : > { %v580_v46 = vmax.f32 %v460_v30, %v564_v38  ;;  %v582_v49 = vmax.f32 %v549_v31, %v566_v39  ;;  %v601_v31 = vpop.permute.xlu0 %600  ;;  %v586_v40 = vpop.permute.xlu1 %585 }
  0xed   : > { %639 = vmatprep.subr.mxu0 %v580_v46  ;;  %728 = vmatprep.subr.mxu1 %v582_v49 }
  0xee   : > { %640 = vmatpush1.msra.mxu0 %v579_v55  ;;  %729 = vmatpush1.msra.mxu1 %v581_v53 }
  0xef   : > { %641 = vmatprep.subr.mxu0 %v576_v57  ;;  %730 = vmatprep.subr.mxu1 %v578_v58  ;;  %v591_v39 = vpop.permute.xlu0 %590 }
  0xf0   : > { %642 = vmatpush1.msra.mxu0 %v575_v47  ;;  %731 = vmatpush1.msra.mxu1 %v577_v48 }
  0xf1   : > { %643 = vmatprep.subr.mxu0 %v572_v60  ;;  %732 = vmatprep.subr.mxu1 %v574_v61 }
  0xf2   : > { %644 = vmatpush1.msra.mxu0 %v571_v63  ;;  %733 = vmatpush1.msra.mxu1 %v573_v1 }
  0xf3   : > { %645 = vmatprep.subr.mxu0 %v568_v2  ;;  %734 = vmatprep.subr.mxu1 %v570_v20 }
  0xf4   : > { %646 = vmatpush1.msra.mxu0 %v567_v62  ;;  %735 = vmatpush1.msra.mxu1 %v569_v3 }
  0xf5   : > { %2139 = vmatmul.mubr.msk.f32.vlgmr.msra.gmra.mxu0 %vm360_vm0, %v2091_v21  ;;  %2143 = vmatmul.mubr.msk.f32.vlgmr.msra.gmra.mxu1 %vm360_vm0, %v2091_v21 }
  0xf6   : > { %685 = vmatprep.mubr.f32.mxu0 %v2237_v0  ;;  %774 = vmatprep.mubr.f32.mxu1 %v2237_v0 }
  0xf9   : > { %2140 = vmatmul.mubr.msk.f32.gmra.mxu0 %vm360_vm0, %v2092_v22  ;;  %2144 = vmatmul.mubr.msk.f32.gmra.mxu1 %vm360_vm0, %v2092_v22 }
  0xfa   : > { %691 = vmatprep.mubr.f32.mxu0 %v2237_v0  ;;  %780 = vmatprep.mubr.f32.mxu1 %v2237_v0 }
  0xfd   : > { %2141 = vmatmul.mubr.msk.f32.gmra.mxu0 %vm360_vm0, %v2093_v23  ;;  %2145 = vmatmul.mubr.msk.f32.gmra.mxu1 %vm360_vm0, %v2093_v23 }
  0xfe   : > { %697 = vmatprep.mubr.f32.mxu0 %v2237_v0  ;;  %786 = vmatprep.mubr.f32.mxu1 %v2237_v0 }
 0x101   : > { %2142 = vmatmul.mubr.msk.f32.gmra.mxu0 %vm360_vm0, %v2094_v24  ;;  %2146 = vmatmul.mubr.msk.f32.gmra.mxu1 %vm360_vm0, %v2094_v24 }
 0x102   : > { %937 = vmatprep.mubr.f32.mxu0 %v2237_v0  ;;  %1026 = vmatprep.mubr.f32.mxu1 %v2237_v0 }
 0x1b5   : > { %v681_v25 = vpop.f32.mrf.mxu0  ;;  %v770_v26 = vpop.f32.mrf.mxu1 }
 0x1b6   : > { %v682_v43 = vadd.f32 %v681_v25, %v586_v40  ;;  %v771_v44 = vadd.f32 %v770_v26, %v586_v40 }
 0x1b7   : > { %v683_v27 = vpop.f32.mrf.mxu0  ;;  %v772_v28 = vpop.f32.mrf.mxu1 }
 0x1b8   : > { %v684_v49 = vadd.f32 %v683_v27, %v586_v40  ;;  %v773_v59 = vadd.f32 %v772_v28, %v586_v40 }
 0x1b9   : > { %v687_v29 = vpop.f32.mrf.mxu0  ;;  %v776_v30 = vpop.f32.mrf.mxu1 }
 0x1ba   : > { %v688_v51 = vadd.f32 %v687_v29, %v591_v39  ;;  %v777_v47 = vadd.f32 %v776_v30, %v591_v39  ;;  %v794_v20 = vadd.f32 %v684_v49, %v2333_v16  ;;  %v796_v16 = vadd.f32 %v773_v59, %v2335_v17  ;;  %v2100_v49 = vld [vmem:[%s2749_s1 + $0x48] sm:$0xff] }
 0x1bb   : > { %v689_v33 = vpop.f32.mrf.mxu0  ;;  %v778_v34 = vpop.f32.mrf.mxu1 }
 0x1bc   : > { %v690_v53 = vadd.f32 %v689_v33, %v591_v39  ;;  %v779_v52 = vadd.f32 %v778_v34, %v591_v39  ;;  %v797_v62 = vadd.f32 %v688_v51, %v2327_v14  ;;  %v812_v33 = vmul.f32 0.01, %v796_v16  ;;  %v2101_v51 = vld [vmem:[%s2749_s1 + $0x50] sm:$0xff] }
 0x1bd   : > { %v693_v35 = vpop.f32.mrf.mxu0  ;;  %v782_v36 = vpop.f32.mrf.mxu1 }
 0x1be   : > { %v694_v54 = vadd.f32 %v693_v35, %v596_v32  ;;  %v783_v55 = vadd.f32 %v782_v36, %v596_v32  ;;  %v798_v22 = vadd.f32 %v690_v53, %v2321_v12  ;;  %v795_v12 = vadd.f32 %v771_v44, %v2341_v19 }
 0x1bf   : > { %v695_v37 = vpop.f32.mrf.mxu0  ;;  %v784_v38 = vpop.f32.mrf.mxu1 }
 0x1c0   : > { %v696_v41 = vadd.f32 %v695_v37, %v596_v32  ;;  %v785_v42 = vadd.f32 %v784_v38, %v596_v32  ;;  %v801_v3 = vadd.f32 %v694_v54, %v2317_v10  ;;  %v803_v21 = vadd.f32 %v783_v55, %v2319_v11  ;;  %v2102_v54 = vld [vmem:[%s2749_s1 + $0x58] sm:$0xff] }
 0x1c1   : > { %v699_v45 = vpop.f32.mrf.mxu0  ;;  %v788_v46 = vpop.f32.mrf.mxu1  ;;  %v793_v11 = vadd.f32 %v682_v43, %v2339_v18  ;;  %v814_v28 = vmul.f32 0.01, %v798_v22  ;;  %v810_v32 = vmul.f32 0.01, %v794_v20  ;;  %v811_v35 = vmul.f32 0.01, %v795_v12 }
 0x1c2   : > { %v700_v56 = vadd.f32 %v699_v45, %v601_v31  ;;  %v789_v57 = vadd.f32 %v788_v46, %v601_v31  ;;  %v802_v48 = vadd.f32 %v696_v41, %v2311_v8  ;;  %v804_v60 = vadd.f32 %v785_v42, %v2313_v9  ;;  %v2099_v46 = vld [vmem:[%s2749_s1 + $0x40] sm:$0xff] }
 0x1c3   : > { %v701_v58 = vpop.f32.mrf.mxu0  ;;  %v790_v50 = vpop.f32.mrf.mxu1  ;;  %v800_v8 = vadd.f32 %v779_v52, %v2325_v13  ;;  %v817_v27 = vmul.f32 0.01, %v801_v3  ;;  %v819_v13 = vmul.f32 0.01, %v803_v21  ;;  %v809_v34 = vmul.f32 0.01, %v793_v11 }
 0x1c4   : > { %v805_v61 = vadd.f32 %v700_v56, %v2305_v6  ;;  %v807_v63 = vadd.f32 %v789_v57, %v2309_v7  ;;  %v702_v1 = vadd.f32 %v701_v58, %v601_v31  ;;  %v791_v2 = vadd.f32 %v790_v50, %v601_v31 }
 0x1c5   : > { %v799_v7 = vadd.f32 %v777_v47, %v2329_v15  ;;  %v818_v23 = vmul.f32 0.01, %v802_v48  ;;  %v820_v14 = vmul.f32 0.01, %v804_v60  ;;  %v813_v15 = vmul.f32 0.01, %v797_v62  ;;  %v859_v47 = vpop.permute.xlu0 %858 }
 0x1c6   : > { %v806_v9 = vadd.f32 %v702_v1, %v2301_v4  ;;  %v808_v6 = vadd.f32 %v791_v2, %v2303_v5  ;;  %v821_v24 = vmul.f32 0.01, %v805_v61  ;;  %v823_v25 = vmul.f32 0.01, %v807_v63 }
 0x1c7   : > { %v816_v4 = vmul.f32 0.01, %v800_v8  ;;  %v815_v30 = vmul.f32 0.01, %v799_v7  ;;  %v2500_v18 = vmax.f32 %v802_v48, %v818_v23  ;;  %v2502_v19 = vmax.f32 %v804_v60, %v820_v14  ;;  %v854_v48 = vpop.permute.xlu1 %853 }
 0x1c8   : > { %v822_v26 = vmul.f32 0.01, %v806_v9  ;;  %v824_v10 = vmul.f32 0.01, %v808_v6  ;;  %v2494_v31 = vmax.f32 %v805_v61, %v821_v24  ;;  %v2496_v17 = vmax.f32 %v807_v63, %v823_v25 }
 0x1c9   : > { %v2504_v36 = vmax.f32 %v801_v3, %v817_v27  ;;  %v2506_v37 = vmax.f32 %v803_v21, %v819_v13  ;;  %v2512_v38 = vmax.f32 %v798_v22, %v814_v28  ;;  %v2514_v39 = vmax.f32 %v800_v8, %v816_v4  ;;  %v849_v3 = vpop.permute.xlu0 %848 }
 0x1ca   : > { %v2490_v29 = vmax.f32 %v806_v9, %v822_v26  ;;  %v2492_v5 = vmax.f32 %v808_v6, %v824_v10  ;;  %v2516_v40 = vmax.f32 %v797_v62, %v813_v15  ;;  %v2518_v41 = vmax.f32 %v799_v7, %v815_v30 }
 0x1cb   : > { %v2524_v42 = vmax.f32 %v794_v20, %v810_v32  ;;  %v2526_v43 = vmax.f32 %v796_v16, %v812_v33  ;;  %v2528_v44 = vmax.f32 %v793_v11, %v809_v34  ;;  %v2530_v45 = vmax.f32 %v795_v12, %v811_v35  ;;  %v844_v21 = vpop.permute.xlu1 %843 }
 0x1cc   : > { %897 = vmatprep.subr.mxu0 %v2490_v29  ;;  %986 = vmatprep.subr.mxu1 %v2492_v5 }
 0x1cd   : > { %898 = vmatpush1.msra.mxu0 %v2494_v31  ;;  %987 = vmatpush1.msra.mxu1 %v2496_v17 }
 0x1ce   : > { %899 = vmatprep.subr.mxu0 %v2500_v18  ;;  %988 = vmatprep.subr.mxu1 %v2502_v19 }
 0x1cf   : > { %900 = vmatpush1.msra.mxu0 %v2504_v36  ;;  %989 = vmatpush1.msra.mxu1 %v2506_v37 }
 0x1d0   : > { %901 = vmatprep.subr.mxu0 %v2512_v38  ;;  %990 = vmatprep.subr.mxu1 %v2514_v39 }
 0x1d1   : > { %902 = vmatpush1.msra.mxu0 %v2516_v40  ;;  %991 = vmatpush1.msra.mxu1 %v2518_v41 }
 0x1d2   : > { %903 = vmatprep.subr.mxu0 %v2524_v42  ;;  %992 = vmatprep.subr.mxu1 %v2526_v43 }
 0x1d3   : > { %904 = vmatpush1.msra.mxu0 %v2528_v44  ;;  %993 = vmatpush1.msra.mxu1 %v2530_v45 }
 0x1d4   : > { %2147 = vmatmul.mubr.msk.f32.vlgmr.msra.gmra.mxu0 %vm360_vm0, %v2099_v46  ;;  %2151 = vmatmul.mubr.msk.f32.vlgmr.msra.gmra.mxu1 %vm360_vm0, %v2099_v46 }
 0x1d5   : > { %943 = vmatprep.mubr.f32.mxu0 %v2237_v0  ;;  %1032 = vmatprep.mubr.f32.mxu1 %v2237_v0 }
 0x1d8   : > { %2148 = vmatmul.mubr.msk.f32.gmra.mxu0 %vm360_vm0, %v2100_v49  ;;  %2152 = vmatmul.mubr.msk.f32.gmra.mxu1 %vm360_vm0, %v2100_v49 }
 0x1d9   : > { %949 = vmatprep.mubr.f32.mxu0 %v2237_v0  ;;  %1038 = vmatprep.mubr.f32.mxu1 %v2237_v0 }
 0x1dc   : > { %2149 = vmatmul.mubr.msk.f32.gmra.mxu0 %vm360_vm0, %v2101_v51  ;;  %2153 = vmatmul.mubr.msk.f32.gmra.mxu1 %vm360_vm0, %v2101_v51 }
 0x1dd   : > { %955 = vmatprep.mubr.f32.mxu0 %v2237_v0  ;;  %1044 = vmatprep.mubr.f32.mxu1 %v2237_v0 }
 0x1e0   : > { %2150 = vmatmul.mubr.msk.f32.gmra.mxu0 %vm360_vm0, %v2102_v54  ;;  %2154 = vmatmul.mubr.msk.f32.gmra.mxu1 %vm360_vm0, %v2102_v54 }
 0x1e1   : > { %1179 = vmatprep.mubr.f32.mxu0 %v2237_v0  ;;  %1268 = vmatprep.mubr.f32.mxu1 %v2237_v0 }
 0x294   : > { %v939_v55 = vpop.f32.mrf.mxu0  ;;  %v1028_v53 = vpop.f32.mrf.mxu1 }
 0x295   : > { %v940_v33 = vadd.f32 %v939_v55, %v844_v21  ;;  %v1029_v34 = vadd.f32 %v1028_v53, %v844_v21 }
 0x296   : > { %v941_v52 = vpop.f32.mrf.mxu0  ;;  %v1030_v56 = vpop.f32.mrf.mxu1 }
 0x297   : > { %v942_v6 = vadd.f32 %v941_v52, %v844_v21  ;;  %v1031_v4 = vadd.f32 %v1030_v56, %v844_v21  ;;  %v1051_v56 = vmul.f32 0.01, %v940_v33 }
 0x298   : > { %v945_v57 = vpop.f32.mrf.mxu0  ;;  %v1034_v58 = vpop.f32.mrf.mxu1 }
 0x299   : > { %v946_v7 = vadd.f32 %v945_v57, %v849_v3  ;;  %v1035_v12 = vadd.f32 %v1034_v58, %v849_v3  ;;  %v1052_v58 = vmul.f32 0.01, %v942_v6 }
 0x29a   : > { %v947_v50 = vpop.f32.mrf.mxu0  ;;  %v1036_v59 = vpop.f32.mrf.mxu1 }
 0x29b   : > { %v948_v14 = vadd.f32 %v947_v50, %v849_v3  ;;  %v1037_v26 = vadd.f32 %v1036_v59, %v849_v3  ;;  %v1055_v57 = vmul.f32 0.01, %v946_v7  ;;  %v1057_v50 = vmul.f32 0.01, %v1035_v12 }
 0x29c   : > { %v951_v60 = vpop.f32.mrf.mxu0  ;;  %v1040_v61 = vpop.f32.mrf.mxu1  ;;  %v1068_v21 = vmax.f32 %v942_v6, %v1052_v58  ;;  %v2104_v6 = vld [vmem:[%s2749_s1 + $0x68] sm:$0xff] }
 0x29d   : > { %v952_v23 = vadd.f32 %v951_v60, %v854_v48  ;;  %v1041_v24 = vadd.f32 %v1040_v61, %v854_v48  ;;  %v1056_v49 = vmul.f32 0.01, %v948_v14  ;;  %v1058_v51 = vmul.f32 0.01, %v1037_v26 }
 0x29e   : > { %v953_v63 = vpop.f32.mrf.mxu0  ;;  %v1042_v1 = vpop.f32.mrf.mxu1  ;;  %v1073_v3 = vmax.f32 %v1035_v12, %v1057_v50 }
 0x29f   : > { %v954_v2 = vadd.f32 %v953_v63, %v854_v48  ;;  %v1043_v22 = vadd.f32 %v1042_v1, %v854_v48  ;;  %v1059_v35 = vmul.f32 0.01, %v952_v23  ;;  %v1061_v46 = vmul.f32 0.01, %v1041_v24  ;;  %v1096_v12 = vpop.permute.xlu1 %1095 }
 0x2a0   : > { %v957_v20 = vpop.f32.mrf.mxu0  ;;  %v1046_v62 = vpop.f32.mrf.mxu1  ;;  %v1054_v48 = vmul.f32 0.01, %v1031_v4  ;;  %v1053_v63 = vmul.f32 0.01, %v1029_v34  ;;  %v1072_v1 = vmax.f32 %v948_v14, %v1056_v49 }
 0x2a1   : > { %v958_v8 = vadd.f32 %v957_v20, %v859_v47  ;;  %v1047_v9 = vadd.f32 %v1046_v62, %v859_v47  ;;  %v1060_v27 = vmul.f32 0.01, %v954_v2  ;;  %v1062_v15 = vmul.f32 0.01, %v1043_v22 }
 0x2a2   : > { %v959_v25 = vpop.f32.mrf.mxu0  ;;  %v1048_v16 = vpop.f32.mrf.mxu1  ;;  %v1075_v55 = vmax.f32 %v952_v23, %v1059_v35  ;;  %v1077_v53 = vmax.f32 %v1041_v24, %v1061_v46  ;;  %v1074_v20 = vmax.f32 %v1037_v26, %v1058_v51  ;;  %v1071_v62 = vmax.f32 %v946_v7, %v1055_v57  ;;  %v2105_v7 = vld [vmem:[%s2749_s1 + $0x70] sm:$0xff]  ;;  %v2106_v23 = vld [vmem:[%s2749_s1 + $0x78] sm:$0xff] }
 0x2a3   : > { %v960_v10 = vadd.f32 %v959_v25, %v859_v47  ;;  %v1049_v11 = vadd.f32 %v1048_v16, %v859_v47  ;;  %v1063_v13 = vmul.f32 0.01, %v958_v8  ;;  %v1065_v28 = vmul.f32 0.01, %v1047_v9 }
 0x2a4   : > { %v1076_v60 = vmax.f32 %v954_v2, %v1060_v27  ;;  %v1078_v61 = vmax.f32 %v1043_v22, %v1062_v15  ;;  %v1067_v2 = vmax.f32 %v940_v33, %v1051_v56  ;;  %v1069_v22 = vmax.f32 %v1029_v34, %v1053_v63  ;;  %v1086_v33 = vpop.permute.xlu1 %1085 }
 0x2a5   : > { %v1064_v30 = vmul.f32 0.01, %v960_v10  ;;  %v1066_v32 = vmul.f32 0.01, %v1049_v11  ;;  %v1079_v59 = vmax.f32 %v958_v8, %v1063_v13  ;;  %v1081_v47 = vmax.f32 %v1047_v9, %v1065_v28  ;;  %v2103_v9 = vld [vmem:[%s2749_s1 + $0x60] sm:$0xff] }
 0x2a6   : > { %v1070_v8 = vmax.f32 %v1031_v4, %v1054_v48 }
 0x2a7   : > { %v1080_v54 = vmax.f32 %v960_v10, %v1064_v30  ;;  %v1082_v52 = vmax.f32 %v1049_v11, %v1066_v32  ;;  %v1101_v11 = vpop.permute.xlu0 %1100 }
 0x2a9   : > { %1139 = vmatprep.subr.mxu0 %v1080_v54  ;;  %1228 = vmatprep.subr.mxu1 %v1082_v52 }
 0x2aa   : > { %1140 = vmatpush1.msra.mxu0 %v1079_v59  ;;  %1229 = vmatpush1.msra.mxu1 %v1081_v47 }
 0x2ab   : > { %1141 = vmatprep.subr.mxu0 %v1076_v60  ;;  %1230 = vmatprep.subr.mxu1 %v1078_v61  ;;  %v1091_v32 = vpop.permute.xlu0 %1090 }
 0x2ac   : > { %1142 = vmatpush1.msra.mxu0 %v1075_v55  ;;  %1231 = vmatpush1.msra.mxu1 %v1077_v53 }
 0x2ad   : > { %1143 = vmatprep.subr.mxu0 %v1072_v1  ;;  %1232 = vmatprep.subr.mxu1 %v1074_v20 }
 0x2ae   : > { %1144 = vmatpush1.msra.mxu0 %v1071_v62  ;;  %1233 = vmatpush1.msra.mxu1 %v1073_v3 }
 0x2af   : > { %1145 = vmatprep.subr.mxu0 %v1068_v21  ;;  %1234 = vmatprep.subr.mxu1 %v1070_v8 }
 0x2b0   : > { %1146 = vmatpush1.msra.mxu0 %v1067_v2  ;;  %1235 = vmatpush1.msra.mxu1 %v1069_v22 }
 0x2b1   : > { %2155 = vmatmul.mubr.msk.f32.vlgmr.msra.gmra.mxu0 %vm360_vm0, %v2103_v9  ;;  %2159 = vmatmul.mubr.msk.f32.vlgmr.msra.gmra.mxu1 %vm360_vm0, %v2103_v9 }
 0x2b2   : > { %1185 = vmatprep.mubr.f32.mxu0 %v2237_v0  ;;  %1274 = vmatprep.mubr.f32.mxu1 %v2237_v0 }
 0x2b5   : > { %2156 = vmatmul.mubr.msk.f32.gmra.mxu0 %vm360_vm0, %v2104_v6  ;;  %2160 = vmatmul.mubr.msk.f32.gmra.mxu1 %vm360_vm0, %v2104_v6 }
 0x2b6   : > { %1191 = vmatprep.mubr.f32.mxu0 %v2237_v0  ;;  %1280 = vmatprep.mubr.f32.mxu1 %v2237_v0 }
 0x2b9   : > { %2157 = vmatmul.mubr.msk.f32.gmra.mxu0 %vm360_vm0, %v2105_v7  ;;  %2161 = vmatmul.mubr.msk.f32.gmra.mxu1 %vm360_vm0, %v2105_v7 }
 0x2ba   : > { %1197 = vmatprep.mubr.f32.mxu0 %v2237_v0  ;;  %1286 = vmatprep.mubr.f32.mxu1 %v2237_v0 }
 0x2bd   : > { %2158 = vmatmul.mubr.msk.f32.gmra.mxu0 %vm360_vm0, %v2106_v23  ;;  %2162 = vmatmul.mubr.msk.f32.gmra.mxu1 %vm360_vm0, %v2106_v23 }
 0x2be   : > { %1437 = vmatprep.mubr.f32.mxu0 %v2237_v0  ;;  %1526 = vmatprep.mubr.f32.mxu1 %v2237_v0 }
 0x371   : > { %v1181_v24 = vpop.f32.mrf.mxu0  ;;  %v1270_v25 = vpop.f32.mrf.mxu1 }
 0x372   : > { %v1182_v46 = vadd.f32 %v1181_v24, %v1086_v33  ;;  %v1271_v49 = vadd.f32 %v1270_v25, %v1086_v33 }
 0x373   : > { %v1183_v16 = vpop.f32.mrf.mxu0  ;;  %v1272_v14 = vpop.f32.mrf.mxu1 }
 0x374   : > { %v1184_v52 = vadd.f32 %v1183_v16, %v1086_v33  ;;  %v1273_v63 = vadd.f32 %v1272_v14, %v1086_v33 }
 0x375   : > { %v1187_v26 = vpop.f32.mrf.mxu0  ;;  %v1276_v10 = vpop.f32.mrf.mxu1 }
 0x376   : > { %v1188_v57 = vadd.f32 %v1187_v26, %v1091_v32  ;;  %v1277_v55 = vadd.f32 %v1276_v10, %v1091_v32  ;;  %v1294_v8 = vadd.f32 %v1184_v52, %v2524_v42  ;;  %v1296_v42 = vadd.f32 %v1273_v63, %v2526_v43  ;;  %v2116_v52 = vld [vmem:[%s2749_s1 + $0x88] sm:$0xff] }
 0x377   : > { %v1189_v27 = vpop.f32.mrf.mxu0  ;;  %v1278_v13 = vpop.f32.mrf.mxu1 }
 0x378   : > { %v1190_v47 = vadd.f32 %v1189_v27, %v1091_v32  ;;  %v1279_v58 = vadd.f32 %v1278_v13, %v1091_v32  ;;  %v1297_v2 = vadd.f32 %v1188_v57, %v2516_v40  ;;  %v1312_v27 = vmul.f32 0.01, %v1296_v42  ;;  %v2117_v57 = vld [vmem:[%s2749_s1 + $0x90] sm:$0xff] }
 0x379   : > { %v1193_v28 = vpop.f32.mrf.mxu0  ;;  %v1282_v4 = vpop.f32.mrf.mxu1 }
 0x37a   : > { %v1194_v50 = vadd.f32 %v1193_v28, %v1096_v12  ;;  %v1283_v59 = vadd.f32 %v1282_v4, %v1096_v12  ;;  %v1298_v6 = vadd.f32 %v1190_v47, %v2512_v38  ;;  %v1295_v38 = vadd.f32 %v1271_v49, %v2530_v45 }
 0x37b   : > { %v1195_v15 = vpop.f32.mrf.mxu0  ;;  %v1284_v30 = vpop.f32.mrf.mxu1 }
 0x37c   : > { %v1196_v34 = vadd.f32 %v1195_v15, %v1096_v12  ;;  %v1285_v35 = vadd.f32 %v1284_v30, %v1096_v12  ;;  %v1301_v22 = vadd.f32 %v1194_v50, %v2504_v36  ;;  %v1303_v9 = vadd.f32 %v1283_v59, %v2506_v37  ;;  %v2118_v50 = vld [vmem:[%s2749_s1 + $0x98] sm:$0xff] }
 0x37d   : > { %v1199_v51 = vpop.f32.mrf.mxu0  ;;  %v1288_v54 = vpop.f32.mrf.mxu1  ;;  %v1293_v37 = vadd.f32 %v1182_v46, %v2528_v44  ;;  %v1314_v14 = vmul.f32 0.01, %v1298_v6  ;;  %v1310_v12 = vmul.f32 0.01, %v1294_v8  ;;  %v1311_v28 = vmul.f32 0.01, %v1295_v38 }
 0x37e   : > { %v1200_v48 = vadd.f32 %v1199_v51, %v1101_v11  ;;  %v1289_v60 = vadd.f32 %v1288_v54, %v1101_v11  ;;  %v1302_v53 = vadd.f32 %v1196_v34, %v2500_v18  ;;  %v1304_v1 = vadd.f32 %v1285_v35, %v2502_v19  ;;  %v2115_v54 = vld [vmem:[%s2749_s1 + $0x80] sm:$0xff] }
 0x37f   : > { %v1201_v61 = vpop.f32.mrf.mxu0  ;;  %v1290_v56 = vpop.f32.mrf.mxu1  ;;  %v1300_v18 = vadd.f32 %v1279_v58, %v2514_v39  ;;  %v1317_v16 = vmul.f32 0.01, %v1301_v22  ;;  %v1319_v39 = vmul.f32 0.01, %v1303_v9  ;;  %v1309_v13 = vmul.f32 0.01, %v1293_v37 }
 0x380   : > { %v1305_v20 = vadd.f32 %v1200_v48, %v2494_v31  ;;  %v1307_v62 = vadd.f32 %v1289_v60, %v2496_v17  ;;  %v1202_v3 = vadd.f32 %v1201_v61, %v1101_v11  ;;  %v1291_v21 = vadd.f32 %v1290_v56, %v1101_v11 }
 0x381   : > { %v1299_v17 = vadd.f32 %v1277_v55, %v2518_v41  ;;  %v1318_v7 = vmul.f32 0.01, %v1302_v53  ;;  %v1320_v40 = vmul.f32 0.01, %v1304_v1  ;;  %v1313_v41 = vmul.f32 0.01, %v1297_v2  ;;  %v1359_v55 = vpop.permute.xlu0 %1358 }
 0x382   : > { %v1306_v19 = vadd.f32 %v1202_v3, %v2490_v29  ;;  %v1308_v31 = vadd.f32 %v1291_v21, %v2492_v5  ;;  %v1321_v23 = vmul.f32 0.01, %v1305_v20  ;;  %v1323_v24 = vmul.f32 0.01, %v1307_v62 }
 0x383   : > { %v1316_v29 = vmul.f32 0.01, %v1300_v18  ;;  %v1315_v10 = vmul.f32 0.01, %v1299_v17  ;;  %v2620_v44 = vmax.f32 %v1302_v53, %v1318_v7  ;;  %v2622_v45 = vmax.f32 %v1304_v1, %v1320_v40  ;;  %v1354_v53 = vpop.permute.xlu1 %1353 }
 0x384   : > { %v1322_v25 = vmul.f32 0.01, %v1306_v19  ;;  %v1324_v36 = vmul.f32 0.01, %v1308_v31  ;;  %v2614_v11 = vmax.f32 %v1305_v20, %v1321_v23  ;;  %v2616_v43 = vmax.f32 %v1307_v62, %v1323_v24 }
 0x385   : > { %v2624_v4 = vmax.f32 %v1301_v22, %v1317_v16  ;;  %v2626_v15 = vmax.f32 %v1303_v9, %v1319_v39  ;;  %v2632_v30 = vmax.f32 %v1298_v6, %v1314_v14  ;;  %v2634_v32 = vmax.f32 %v1300_v18, %v1316_v29  ;;  %v1349_v22 = vpop.permute.xlu0 %1348 }
 0x386   : > { %v2610_v26 = vmax.f32 %v1306_v19, %v1322_v25  ;;  %v2612_v5 = vmax.f32 %v1308_v31, %v1324_v36  ;;  %v2636_v33 = vmax.f32 %v1297_v2, %v1313_v41  ;;  %v2638_v34 = vmax.f32 %v1299_v17, %v1315_v10 }
 0x387   : > { %v2644_v35 = vmax.f32 %v1294_v8, %v1310_v12  ;;  %v2646_v46 = vmax.f32 %v1296_v42, %v1312_v27  ;;  %v2648_v49 = vmax.f32 %v1293_v37, %v1309_v13  ;;  %v2650_v51 = vmax.f32 %v1295_v38, %v1311_v28  ;;  %v1344_v9 = vpop.permute.xlu1 %1343 }
 0x388   : > { %1397 = vmatprep.subr.mxu0 %v2610_v26  ;;  %1486 = vmatprep.subr.mxu1 %v2612_v5 }
 0x389   : > { %1398 = vmatpush1.msra.mxu0 %v2614_v11  ;;  %1487 = vmatpush1.msra.mxu1 %v2616_v43 }
 0x38a   : > { %1399 = vmatprep.subr.mxu0 %v2620_v44  ;;  %1488 = vmatprep.subr.mxu1 %v2622_v45 }
 0x38b   : > { %1400 = vmatpush1.msra.mxu0 %v2624_v4  ;;  %1489 = vmatpush1.msra.mxu1 %v2626_v15 }
 0x38c   : > { %1401 = vmatprep.subr.mxu0 %v2632_v30  ;;  %1490 = vmatprep.subr.mxu1 %v2634_v32 }
 0x38d   : > { %1402 = vmatpush1.msra.mxu0 %v2636_v33  ;;  %1491 = vmatpush1.msra.mxu1 %v2638_v34 }
 0x38e   : > { %1403 = vmatprep.subr.mxu0 %v2644_v35  ;;  %1492 = vmatprep.subr.mxu1 %v2646_v46 }
 0x38f   : > { %1404 = vmatpush1.msra.mxu0 %v2648_v49  ;;  %1493 = vmatpush1.msra.mxu1 %v2650_v51 }
 0x390   : > { %2163 = vmatmul.mubr.msk.f32.vlgmr.msra.gmra.mxu0 %vm360_vm0, %v2115_v54  ;;  %2167 = vmatmul.mubr.msk.f32.vlgmr.msra.gmra.mxu1 %vm360_vm0, %v2115_v54 }
 0x391   : > { %1443 = vmatprep.mubr.f32.mxu0 %v2237_v0  ;;  %1532 = vmatprep.mubr.f32.mxu1 %v2237_v0 }
 0x394   : > { %2164 = vmatmul.mubr.msk.f32.gmra.mxu0 %vm360_vm0, %v2116_v52  ;;  %2168 = vmatmul.mubr.msk.f32.gmra.mxu1 %vm360_vm0, %v2116_v52 }
 0x395   : > { %1449 = vmatprep.mubr.f32.mxu0 %v2237_v0  ;;  %1538 = vmatprep.mubr.f32.mxu1 %v2237_v0 }
 0x398   : > { %2165 = vmatmul.mubr.msk.f32.gmra.mxu0 %vm360_vm0, %v2117_v57  ;;  %2169 = vmatmul.mubr.msk.f32.gmra.mxu1 %vm360_vm0, %v2117_v57 }
 0x399   : > { %1455 = vmatprep.mubr.f32.mxu0 %v2237_v0  ;;  %1544 = vmatprep.mubr.f32.mxu1 %v2237_v0 }
 0x39c   : > { %2166 = vmatmul.mubr.msk.f32.gmra.mxu0 %vm360_vm0, %v2118_v50  ;;  %2170 = vmatmul.mubr.msk.f32.gmra.mxu1 %vm360_vm0, %v2118_v50 }
 0x39d   : > { %1679 = vmatprep.mubr.f32.mxu0 %v2237_v0  ;;  %1768 = vmatprep.mubr.f32.mxu1 %v2237_v0 }
 0x450   : > { %v1439_v59 = vpop.f32.mrf.mxu0  ;;  %v1528_v47 = vpop.f32.mrf.mxu1 }
 0x451   : > { %v1440_v27 = vadd.f32 %v1439_v59, %v1344_v9  ;;  %v1529_v13 = vadd.f32 %v1528_v47, %v1344_v9 }
 0x452   : > { %v1441_v58 = vpop.f32.mrf.mxu0  ;;  %v1530_v48 = vpop.f32.mrf.mxu1 }
 0x453   : > { %v1442_v31 = vadd.f32 %v1441_v58, %v1344_v9  ;;  %v1531_v29 = vadd.f32 %v1530_v48, %v1344_v9  ;;  %v1551_v48 = vmul.f32 0.01, %v1440_v27 }
 0x454   : > { %v1445_v60 = vpop.f32.mrf.mxu0  ;;  %v1534_v61 = vpop.f32.mrf.mxu1 }
 0x455   : > { %v1446_v17 = vadd.f32 %v1445_v60, %v1349_v22  ;;  %v1535_v38 = vadd.f32 %v1534_v61, %v1349_v22  ;;  %v1552_v61 = vmul.f32 0.01, %v1442_v31 }
 0x456   : > { %v1447_v56 = vpop.f32.mrf.mxu0  ;;  %v1536_v63 = vpop.f32.mrf.mxu1 }
 0x457   : > { %v1448_v40 = vadd.f32 %v1447_v56, %v1349_v22  ;;  %v1537_v25 = vadd.f32 %v1536_v63, %v1349_v22  ;;  %v1555_v60 = vmul.f32 0.01, %v1446_v17  ;;  %v1557_v56 = vmul.f32 0.01, %v1535_v38 }
 0x458   : > { %v1451_v1 = vpop.f32.mrf.mxu0  ;;  %v1540_v20 = vpop.f32.mrf.mxu1  ;;  %v1568_v9 = vmax.f32 %v1442_v31, %v1552_v61  ;;  %v2120_v31 = vld [vmem:[%s2749_s1 + $0xa8] sm:$0xff] }
 0x459   : > { %v1452_v7 = vadd.f32 %v1451_v1, %v1354_v53  ;;  %v1541_v23 = vadd.f32 %v1540_v20, %v1354_v53  ;;  %v1556_v52 = vmul.f32 0.01, %v1448_v40  ;;  %v1558_v57 = vmul.f32 0.01, %v1537_v25 }
 0x45a   : > { %v1453_v62 = vpop.f32.mrf.mxu0  ;;  %v1542_v3 = vpop.f32.mrf.mxu1  ;;  %v1573_v22 = vmax.f32 %v1535_v38, %v1557_v56 }
 0x45b   : > { %v1454_v21 = vadd.f32 %v1453_v62, %v1354_v53  ;;  %v1543_v6 = vadd.f32 %v1542_v3, %v1354_v53  ;;  %v1559_v28 = vmul.f32 0.01, %v1452_v7  ;;  %v1561_v54 = vmul.f32 0.01, %v1541_v23  ;;  %v1596_v38 = vpop.permute.xlu1 %1595 }
 0x45c   : > { %v1457_v8 = vpop.f32.mrf.mxu0  ;;  %v1546_v2 = vpop.f32.mrf.mxu1  ;;  %v1554_v53 = vmul.f32 0.01, %v1531_v29  ;;  %v1553_v62 = vmul.f32 0.01, %v1529_v13  ;;  %v1572_v3 = vmax.f32 %v1448_v40, %v1556_v52 }
 0x45d   : > { %v1458_v18 = vadd.f32 %v1457_v8, %v1359_v55  ;;  %v1547_v19 = vadd.f32 %v1546_v2, %v1359_v55  ;;  %v1560_v16 = vmul.f32 0.01, %v1454_v21  ;;  %v1562_v41 = vmul.f32 0.01, %v1543_v6 }
 0x45e   : > { %v1459_v24 = vpop.f32.mrf.mxu0  ;;  %v1548_v42 = vpop.f32.mrf.mxu1  ;;  %v1575_v59 = vmax.f32 %v1452_v7, %v1559_v28  ;;  %v1577_v47 = vmax.f32 %v1541_v23, %v1561_v54  ;;  %v1574_v8 = vmax.f32 %v1537_v25, %v1558_v57  ;;  %v1571_v2 = vmax.f32 %v1446_v17, %v1555_v60  ;;  %v2121_v17 = vld [vmem:[%s2749_s1 + $0xb0] sm:$0xff]  ;;  %v2122_v7 = vld [vmem:[%s2749_s1 + $0xb8] sm:$0xff] }
 0x45f   : > { %v1460_v36 = vadd.f32 %v1459_v24, %v1359_v55  ;;  %v1549_v37 = vadd.f32 %v1548_v42, %v1359_v55  ;;  %v1563_v39 = vmul.f32 0.01, %v1458_v18  ;;  %v1565_v14 = vmul.f32 0.01, %v1547_v19 }
 0x460   : > { %v1576_v1 = vmax.f32 %v1454_v21, %v1560_v16  ;;  %v1578_v20 = vmax.f32 %v1543_v6, %v1562_v41  ;;  %v1567_v21 = vmax.f32 %v1440_v27, %v1551_v48  ;;  %v1569_v6 = vmax.f32 %v1529_v13, %v1553_v62  ;;  %v1586_v27 = vpop.permute.xlu1 %1585 }
 0x461   : > { %v1564_v10 = vmul.f32 0.01, %v1460_v36  ;;  %v1566_v12 = vmul.f32 0.01, %v1549_v37  ;;  %v1579_v63 = vmax.f32 %v1458_v18, %v1563_v39  ;;  %v1581_v55 = vmax.f32 %v1547_v19, %v1565_v14  ;;  %v2119_v19 = vld [vmem:[%s2749_s1 + $0xa0] sm:$0xff] }
 0x462   : > { %v1570_v18 = vmax.f32 %v1531_v29, %v1554_v53 }
 0x463   : > { %v1580_v50 = vmax.f32 %v1460_v36, %v1564_v10  ;;  %v1582_v58 = vmax.f32 %v1549_v37, %v1566_v12  ;;  %v1601_v37 = vpop.permute.xlu0 %1600 }
 0x465   : > { %1639 = vmatprep.subr.mxu0 %v1580_v50  ;;  %1728 = vmatprep.subr.mxu1 %v1582_v58 }
 0x466   : > { %1640 = vmatpush1.msra.mxu0 %v1579_v63  ;;  %1729 = vmatpush1.msra.mxu1 %v1581_v55 }
 0x467   : > { %1641 = vmatprep.subr.mxu0 %v1576_v1  ;;  %1730 = vmatprep.subr.mxu1 %v1578_v20  ;;  %v1591_v12 = vpop.permute.xlu0 %1590 }
 0x468   : > { %1642 = vmatpush1.msra.mxu0 %v1575_v59  ;;  %1731 = vmatpush1.msra.mxu1 %v1577_v47 }
 0x469   : > { %1643 = vmatprep.subr.mxu0 %v1572_v3  ;;  %1732 = vmatprep.subr.mxu1 %v1574_v8 }
 0x46a   : > { %1644 = vmatpush1.msra.mxu0 %v1571_v2  ;;  %1733 = vmatpush1.msra.mxu1 %v1573_v22 }
 0x46b   : > { %1645 = vmatprep.subr.mxu0 %v1568_v9  ;;  %1734 = vmatprep.subr.mxu1 %v1570_v18 }
 0x46c   : > { %1646 = vmatpush1.msra.mxu0 %v1567_v21  ;;  %1735 = vmatpush1.msra.mxu1 %v1569_v6 }
 0x46d   : > { %2171 = vmatmul.mubr.msk.f32.vlgmr.msra.gmra.mxu0 %vm360_vm0, %v2119_v19  ;;  %2175 = vmatmul.mubr.msk.f32.vlgmr.msra.gmra.mxu1 %vm360_vm0, %v2119_v19 }
 0x46e   : > { %1685 = vmatprep.mubr.f32.mxu0 %v2237_v0  ;;  %1774 = vmatprep.mubr.f32.mxu1 %v2237_v0 }
 0x471   : > { %2172 = vmatmul.mubr.msk.f32.gmra.mxu0 %vm360_vm0, %v2120_v31  ;;  %2176 = vmatmul.mubr.msk.f32.gmra.mxu1 %vm360_vm0, %v2120_v31 }
 0x472   : > { %1691 = vmatprep.mubr.f32.mxu0 %v2237_v0  ;;  %1780 = vmatprep.mubr.f32.mxu1 %v2237_v0 }
 0x475   : > { %2173 = vmatmul.mubr.msk.f32.gmra.mxu0 %vm360_vm0, %v2121_v17  ;;  %2177 = vmatmul.mubr.msk.f32.gmra.mxu1 %vm360_vm0, %v2121_v17 }
 0x476   : > { %1697 = vmatprep.mubr.f32.mxu0 %v2237_v0  ;;  %1786 = vmatprep.mubr.f32.mxu1 %v2237_v0 }
 0x479   : > { %2174 = vmatmul.mubr.msk.f32.gmra.mxu0 %vm360_vm0, %v2122_v7  ;;  %2178 = vmatmul.mubr.msk.f32.gmra.mxu1 %vm360_vm0, %v2122_v7 }
 0x47a   : > { %1913 = vmatprep.mubr.f32.mxu0 %v2237_v0  ;;  %1984 = vmatprep.mubr.f32.mxu1 %v2237_v0 }
 0x52d   : > { %v1681_v23 = vpop.f32.mrf.mxu0  ;;  %v1770_v24 = vpop.f32.mrf.mxu1 }
 0x52e   : > { %v1682_v54 = vadd.f32 %v1681_v23, %v1586_v27  ;;  %v1771_v0 = vadd.f32 %v1770_v24, %v1586_v27 }
 0x52f   : > { %v1683_v42 = vpop.f32.mrf.mxu0  ;;  %v1772_v40 = vpop.f32.mrf.mxu1 }
 0x530   : > { %v1684_v50 = vadd.f32 %v1683_v42, %v1586_v27  ;;  %v1773_v48 = vadd.f32 %v1772_v40, %v1586_v27 }
 0x531   : > { %v1687_v25 = vpop.f32.mrf.mxu0  ;;  %v1776_v36 = vpop.f32.mrf.mxu1 }
 0x532   : > { %v1688_v58 = vadd.f32 %v1687_v25, %v1591_v12  ;;  %v1777_v62 = vadd.f32 %v1776_v36, %v1591_v12  ;;  %v1794_v9 = vadd.f32 %v1684_v50, %v2644_v35  ;;  %v1796_v35 = vadd.f32 %v1773_v48, %v2646_v46 }
 0x533   : > { %v1689_v16 = vpop.f32.mrf.mxu0  ;;  %v1778_v39 = vpop.f32.mrf.mxu1 }
 0x534   : > { %v1690_v63 = vadd.f32 %v1689_v16, %v1591_v12  ;;  %v1779_v55 = vadd.f32 %v1778_v39, %v1591_v12  ;;  %v1797_v18 = vadd.f32 %v1688_v58, %v2636_v33  ;;  %v1812_v16 = vmul.f32 0.01, %v1796_v35 }
 0x535   : > { %v1693_v14 = vpop.f32.mrf.mxu0  ;;  %v1782_v29 = vpop.f32.mrf.mxu1 }
 0x536   : > { %v1694_v60 = vadd.f32 %v1693_v14, %v1596_v38  ;;  %v1783_v56 = vadd.f32 %v1782_v29, %v1596_v38  ;;  %v1798_v19 = vadd.f32 %v1690_v63, %v2632_v30  ;;  %v1795_v30 = vadd.f32 %v1771_v0, %v2650_v51 }
 0x537   : > { %v1695_v41 = vpop.f32.mrf.mxu0  ;;  %v1784_v10 = vpop.f32.mrf.mxu1  ;;  %v1813_v25 = vmul.f32 0.01, %v1797_v18 }
 0x538   : > { %v1696_v13 = vadd.f32 %v1695_v41, %v1596_v38  ;;  %v1785_v28 = vadd.f32 %v1784_v10, %v1596_v38  ;;  %v1801_v21 = vadd.f32 %v1694_v60, %v2624_v4  ;;  %v1803_v6 = vadd.f32 %v1783_v56, %v2626_v15 }
 0x539   : > { %v1699_v52 = vpop.f32.mrf.mxu0  ;;  %v1788_v57 = vpop.f32.mrf.mxu1  ;;  %v1793_v15 = vadd.f32 %v1682_v54, %v2648_v49  ;;  %v1814_v42 = vmul.f32 0.01, %v1798_v19  ;;  %v1810_v38 = vmul.f32 0.01, %v1794_v9  ;;  %v1811_v49 = vmul.f32 0.01, %v1795_v30 }
 0x53a   : > { %v1700_v61 = vadd.f32 %v1699_v52, %v1601_v37  ;;  %v1789_v53 = vadd.f32 %v1788_v57, %v1601_v37  ;;  %v1802_v59 = vadd.f32 %v1696_v13, %v2620_v44  ;;  %v1804_v47 = vadd.f32 %v1785_v28, %v2622_v45  ;;  %v322_v52 = vld [vmem:[%s2751_s3] sm:$0xff]  ;;  %v1844_v57 = vpop.permute.xlu0 %1843 }
 0x53b   : > { %v1701_v1 = vpop.f32.mrf.mxu0  ;;  %v1790_v20 = vpop.f32.mrf.mxu1  ;;  %v1800_v44 = vadd.f32 %v1779_v55, %v2634_v32  ;;  %v1817_v24 = vmul.f32 0.01, %v1801_v21  ;;  %v1819_v32 = vmul.f32 0.01, %v1803_v6  ;;  %v1809_v14 = vmul.f32 0.01, %v1793_v15 }
 0x53c   : > { %v1805_v3 = vadd.f32 %v1700_v61, %v2614_v11  ;;  %v1807_v8 = vadd.f32 %v1789_v53, %v2616_v43  ;;  %v1702_v2 = vadd.f32 %v1701_v1, %v1601_v37  ;;  %v1791_v22 = vadd.f32 %v1790_v20, %v1601_v37 }
 0x53d   : > { %v1799_v43 = vadd.f32 %v1777_v62, %v2638_v34  ;;  %v1818_v31 = vmul.f32 0.01, %v1802_v59  ;;  %v1820_v33 = vmul.f32 0.01, %v1804_v47  ;;  %v1833_v29 = vmax.f32 %v1801_v21, %v1817_v24 }
 0x53e   : > { %v1806_v45 = vadd.f32 %v1702_v2, %v2610_v26  ;;  %v1808_v11 = vadd.f32 %v1791_v22, %v2612_v5  ;;  %v1821_v17 = vmul.f32 0.01, %v1805_v3  ;;  %v1823_v7 = vmul.f32 0.01, %v1807_v8 }
 0x53f   : > { %v1816_v26 = vmul.f32 0.01, %v1800_v44  ;;  %v1815_v34 = vmul.f32 0.01, %v1799_v43  ;;  %v1834_v46 = vmax.f32 %v1802_v59, %v1818_v31  ;;  %v1836_v39 = vmax.f32 %v1804_v47, %v1820_v33 }
 0x540   : > { %v1822_v23 = vmul.f32 0.01, %v1806_v45  ;;  %v1824_v4 = vmul.f32 0.01, %v1808_v11  ;;  %v1837_v36 = vmax.f32 %v1805_v3, %v1821_v17  ;;  %v1839_v37 = vmax.f32 %v1807_v8, %v1823_v7 }
 0x541   : > { %v1835_v51 = vmax.f32 %v1803_v6, %v1819_v32  ;;  %v1830_v41 = vmax.f32 %v1798_v19, %v1814_v42  ;;  %v1832_v10 = vmax.f32 %v1800_v44, %v1816_v26  ;;  %v1829_v12 = vmax.f32 %v1797_v18, %v1813_v25 }
 0x542   : > { %v1838_v40 = vmax.f32 %v1806_v45, %v1822_v23  ;;  %v1840_v5 = vmax.f32 %v1808_v11, %v1824_v4  ;;  %v1831_v27 = vmax.f32 %v1799_v43, %v1815_v34  ;;  %v1826_v13 = vmax.f32 %v1794_v9, %v1810_v38 }
 0x543   : > { %v1828_v28 = vmax.f32 %v1796_v35, %v1812_v16  ;;  %v1825_v54 = vmax.f32 %v1793_v15, %v1809_v14  ;;  %v1827_v0 = vmax.f32 %v1795_v30, %v1811_v49 }
 0x544   : > { %1873 = vmatprep.subr.mxu0 %v1838_v40  ;;  %1944 = vmatprep.subr.mxu1 %v1840_v5 }
 0x545   : > { %1874 = vmatpush1.msra.mxu0 %v1837_v36  ;;  %1945 = vmatpush1.msra.mxu1 %v1839_v37 }
 0x546   : > { %1875 = vmatprep.subr.mxu0 %v1834_v46  ;;  %1946 = vmatprep.subr.mxu1 %v1836_v39 }
 0x547   : > { %1876 = vmatpush1.msra.mxu0 %v1833_v29  ;;  %1947 = vmatpush1.msra.mxu1 %v1835_v51 }
 0x548   : > { %1877 = vmatprep.subr.mxu0 %v1830_v41  ;;  %1948 = vmatprep.subr.mxu1 %v1832_v10 }
 0x549   : > { %1878 = vmatpush1.msra.mxu0 %v1829_v12  ;;  %1949 = vmatpush1.msra.mxu1 %v1831_v27 }
 0x54a   : > { %1879 = vmatprep.subr.mxu0 %v1826_v13  ;;  %1950 = vmatprep.subr.mxu1 %v1828_v28 }
 0x54b   : > { %1880 = vmatpush1.msra.mxu0 %v1825_v54  ;;  %1951 = vmatpush1.msra.mxu1 %v1827_v0 }
 0x54c   : > { %2179 = vmatmul.mubr.msk.f32.vlgmr.msra.gmra.mxu0 %vm360_vm0, %v322_v52  ;;  %2180 = vmatmul.mubr.msk.f32.vlgmr.msra.gmra.mxu1 %vm360_vm0, %v322_v52 }
 0x60c   : > { %v1915_v50 = vpop.f32.mrf.mxu0  ;;  %v1986_v58 = vpop.f32.mrf.mxu1 }
 0x60d   : > { %v1916_v60 = vadd.f32 %v1915_v50, %v1844_v57  ;;  %v1987_v56 = vadd.f32 %v1986_v58, %v1844_v57 }
 0x60e   : > { %v1917_v63 = vpop.f32.mrf.mxu0  ;;  %v1988_v55 = vpop.f32.mrf.mxu1 }
 0x60f   : > { %1991 = vst [vmem:[%s262_s24] sm:$0xff] %v1916_v60  ;;  %1993 = vst [vmem:[%s262_s24 + $0x10] sm:$0xff] %v1987_v56  ;;  %v1918_v61 = vadd.f32 %v1917_v63, %v1844_v57  ;;  %v1989_v53 = vadd.f32 %v1988_v55, %v1844_v57 }
 0x611   : > { %1992 = vst [vmem:[%s262_s24 + $0x8] sm:$0xff] %v1918_v61  ;;  %1994 = vst [vmem:[%s262_s24 + $0x18] sm:$0xff] %v1989_v53 }
 0x612 PF: > { %s15_s20 = sadd.s32 1, %s2235_s20   ;;  %s2754_s18 = smov %s2231_s19 }
 0x613   : > { %p12_p5 = scmp.ge.s32.totalorder %s15_s20, 4   ;;  %s2755_s19 = smov %s2757_s21 }
 0x615   :  { %14 = sbr.rel (!%p12_p5) target bundleno = 2 (0x2), region = 80 }

</bundles_post_ra>
